<compile_context>
chip_gen: v6e
topology: v6e:2x2x1
jax: 0.10.0
libtpu: 0.0.40
codegen_flags: <defaults>
</compile_context>

<pallas_src>
import numpy as np
import jax
import jax.numpy as jnp
from jax.experimental import pallas as pl
from jax.experimental.pallas import tpu as pltpu


def _vmem_spec():
    return pl.BlockSpec(memory_space=pltpu.MemorySpace.VMEM)


# ------------------------------ fused kernel ---------------------------------
def net_kernel(x_ref, ea_ref, S_ref, A_ref, Q_ref, wn_ref, b_ref, out_ref):
    x = x_ref[...]       # [N, 1]  node features
    ea = ea_ref[...]     # [E, 2]  edge features
    S = S_ref[...]       # [E, N]  source gather (one-hot)
    A = A_ref[...]       # [N, E]  target scatter-add (one-hot)
    Q = Q_ref[...]       # [6G, N] node-row permutation: graph-major -> position-major
    WN = wn_ref[...]     # [11, 24, 16] packed weight slab
    B = b_ref[...]       # [11, 16]     packed bias slab

    G = out_ref.shape[0]  # number of graphs (static)

    # ---- unpack parameter slabs (static slices, zero-padded on the host) ----
    wx1 = WN[0, 0:1, 0:9];   bx1 = B[0:1, 0:9]
    wx2 = WN[1, 0:9, 0:9];   bx2 = B[1:2, 0:9]
    wx3 = WN[2, 0:9, 0:9];   bx3 = B[2:3, 0:9]
    wo1 = WN[3, 0:9, 0:9];   bo1 = B[6:7, 0:9]
    wo2 = WN[4, 0:9, 0:9];   bo2 = B[7:8, 0:9]
    wo3 = WN[5, 0:9, 0:4];   bo3 = B[8:9, 0:4]
    we1 = WN[6, 0:2, 0:9];   be1 = B[3:4, 0:9]
    we2 = WN[7, 0:2, 0:9];   be2 = B[4:5, 0:9]
    we3 = WN[8, 0:2, 0:9];   be3 = B[5:6, 0:9]
    w1 = WN[9, 0:24, 0:8];   b1 = B[9:10, 0:8]
    w2 = WN[10, 0:8, 0:4];   b2 = B[10:11, 0:4]

    def edge_lin(We, be):
        # lin_edge: [E,2] @ [2,P] expanded as broadcasts (avoid degenerate-K matmul)
        return ea[:, 0:1] * We[0:1, :] + ea[:, 1:2] * We[1:2, :] + be

    def propagate(to_prop, We, be, Wo, bo):
        e_feat = edge_lin(We, be)                                          # [E, P]
        x_j = jnp.dot(S, to_prop, preferred_element_type=jnp.float32)      # [E, P] gather
        msg = x_j * e_feat                                                 # message()
        agg = jnp.dot(A, msg, preferred_element_type=jnp.float32)          # [N, P] scatter-add
        return jnp.dot(agg, Wo, preferred_element_type=jnp.float32) + bo   # lin_out

    # conv1: in_channels = 1 -> lin_x as broadcast multiply instead of K=1 matmul
    to_prop1 = x * wx1 + bx1                                               # [N, 9]
    h1 = jnp.maximum(propagate(to_prop1, we1, be1, wo1, bo1), 0.0)
    # dropout -> identity (eval)

    # conv2
    to_prop2 = jnp.dot(h1, wx2, preferred_element_type=jnp.float32) + bx2
    h2 = jnp.maximum(propagate(to_prop2, we2, be2, wo2, bo2), 0.0)

    # conv3
    to_prop3 = jnp.dot(h2, wx3, preferred_element_type=jnp.float32) + bx3
    h3 = jnp.maximum(propagate(to_prop3, we3, be3, wo3, bo3), 0.0)         # [N, 4]

    # ---- head: x.view(-1, 24) @ w1 without any in-kernel lane reshape -------
    # Q reorders node rows to position-major so that the nodes sitting at
    # position n of every graph form a contiguous [G, 4] sublane slice; that
    # slice contracts against the matching [4, 8] chunk of w1.
    QH = jnp.dot(Q, h3, preferred_element_type=jnp.float32)                # [6G, 4]
    acc = jnp.zeros((G, 8), jnp.float32)
    for n in range(6):
        q_n = QH[n * G:(n + 1) * G, :]                                     # [G, 4]
        w_n = w1[4 * n:4 * (n + 1), :]                                     # [4, 8]
        # unrolled K=4 contraction on the VPU (avoid degenerate-K MXU pass)
        acc = acc + (q_n[:, 0:1] * w_n[0:1, :] + q_n[:, 1:2] * w_n[1:2, :]
                     + q_n[:, 2:3] * w_n[2:3, :] + q_n[:, 3:4] * w_n[3:4, :])
    hid = jnp.maximum(acc + b1, 0.0)                                       # [G, 8]
    logits = jnp.dot(hid, w2, preferred_element_type=jnp.float32) + b2     # [G, 4]

    # log_softmax (stable)
    z = logits - jnp.max(logits, axis=-1, keepdims=True)
    out_ref[...] = z - jnp.log(jnp.sum(jnp.exp(z), axis=-1, keepdims=True))


# --------------------------------- wrapper -----------------------------------
def net_forward(x, edge_attr, S, A, Q, WN, B):
    n_graphs = Q.shape[0] // 6
    args = [x, edge_attr, S, A, Q, WN, B]
    return pl.pallas_call(
        net_kernel,
        out_shape=jax.ShapeDtypeStruct((n_graphs, 4), jnp.float32),
        in_specs=[_vmem_spec() for _ in args],
        out_specs=_vmem_spec(),
    )(*args)


# ----------------------------- host-side packing -----------------------------
def pack_params(p):
    """Pack all 22 parameter tensors into two zero-padded slabs (2 DMAs)."""
    WN = np.zeros((11, 24, 16), np.float32)

    def put_w(i, w):
        w = np.asarray(w, np.float32)
        WN[i, :w.shape[0], :w.shape[1]] = w

    put_w(0, p["wx1"]); put_w(1, p["wx2"]); put_w(2, p["wx3"])
    put_w(3, p["wo1"]); put_w(4, p["wo2"]); put_w(5, p["wo3"])
    put_w(6, p["we1"]); put_w(7, p["we2"]); put_w(8, p["we3"])
    put_w(9, p["w1"]);  put_w(10, p["w2"])

    B = np.zeros((11, 16), np.float32)

    def put_b(i, b):
        b = np.asarray(b, np.float32).reshape(-1)
        B[i, :b.shape[0]] = b

    put_b(0, p["bx1"]); put_b(1, p["bx2"]); put_b(2, p["bx3"])
    put_b(3, p["be1"]); put_b(4, p["be2"]); put_b(5, p["be3"])
    put_b(6, p["bo1"]); put_b(7, p["bo2"]); put_b(8, p["bo3"])
    put_b(9, p["b1"]);  put_b(10, p["b2"])

    return jnp.asarray(WN), jnp.asarray(B)


def build_head_perm(n_graphs, nodes_per_graph=6):
    """Q[n*G + g, nodes_per_graph*g + n] = 1: graph-major rows -> position-major.

    This encodes exactly the same node ordering assumption as torch's
    x.view(-1, 6*4) (nodes of each graph contiguous and in order)."""
    N = n_graphs * nodes_per_graph
    Q = np.zeros((nodes_per_graph * n_graphs, N), np.float32)
    for n in range(nodes_per_graph):
        for g in range(n_graphs):
            Q[n * n_graphs + g, nodes_per_graph * g + n] = 1.0
    return jnp.asarray(Q)


# ------------------------------- reference -----------------------------------
def ref_forward(x, edge_attr, S, A, p):
    def gnn(h, wx, bx, we, be, wo, bo):
        to_prop = h @ wx + bx
        ef = edge_attr @ we + be
        msg = (S @ to_prop) * ef
        agg = A @ msg
        return agg @ wo + bo

    h = jax.nn.relu(gnn(x, p["wx1"], p["bx1"], p["we1"], p["be1"], p["wo1"], p["bo1"]))
    h = jax.nn.relu(gnn(h, p["wx2"], p["bx2"], p["we2"], p["be2"], p["wo2"], p["bo2"]))
    h = jax.nn.relu(gnn(h, p["wx3"], p["bx3"], p["we3"], p["be3"], p["wo3"], p["bo3"]))
    xf = h.reshape(-1, 24)
    h = jax.nn.relu(xf @ p["w1"] + p["b1"])
    logits = h @ p["w2"] + p["b2"]
    return jax.nn.log_softmax(logits, axis=1)


# ------------------------------ param helpers ---------------------------------
def linear_params(key, fan_in, fan_out):
    # Deterministic init, U(-1/sqrt(fan_in), 1/sqrt(fan_in)) like torch.nn.Linear defaults.
    k1, k2 = jax.random.split(key)
    bound = 1.0 / np.sqrt(fan_in)
    W = jax.random.uniform(k1, (fan_in, fan_out), jnp.float32, -bound, bound)
    b = jax.random.uniform(k2, (1, fan_out), jnp.float32, -bound, bound)
    return W, b


if __name__ == "__main__":
    key = jax.random.PRNGKey(0)
    keys = jax.random.split(key, 16)

    # 2 graphs x 6 nodes (view(-1, 24) requires 6 nodes / graph)
    n_graphs, nodes_per_graph = 2, 6
    N = n_graphs * nodes_per_graph
    src, dst = [], []
    for g in range(n_graphs):
        base = nodes_per_graph * g
        for i in range(nodes_per_graph - 1):            # bidirectional chain
            src += [base + i, base + i + 1]
            dst += [base + i + 1, base + i]
    edge_index = np.asarray([src, dst], dtype=np.int32)  # [2, E]
    E = edge_index.shape[1]

    # Dense gather / scatter one-hot operators
    S = np.zeros((E, N), np.float32)
    S[np.arange(E), edge_index[0]] = 1.0                 # x_j gather (sources)
    A = np.zeros((N, E), np.float32)
    A[edge_index[1], np.arange(E)] = 1.0                 # scatter-add to targets
    S = jnp.asarray(S)
    A = jnp.asarray(A)
    Q = build_head_perm(n_graphs, nodes_per_graph)       # head reorder matrix

    x = jax.random.normal(keys[0], (N, 1), jnp.float32)          # node features
    edge_attr = jax.random.normal(keys[1], (E, 2), jnp.float32)  # edge features

    params = {}
    # trackletGNN(1, 9, 9, 2)
    params["wx1"], params["bx1"] = linear_params(keys[2], 1, 9)
    params["we1"], params["be1"] = linear_params(keys[3], 2, 9)
    params["wo1"], params["bo1"] = linear_params(keys[4], 9, 9)
    # trackletGNN(9, 9, 9, 2)
    params["wx2"], params["bx2"] = linear_params(keys[5], 9, 9)
    params["we2"], params["be2"] = linear_params(keys[6], 2, 9)
    params["wo2"], params["bo2"] = linear_params(keys[7], 9, 9)
    # trackletGNN(9, 4, 9, 2)
    params["wx3"], params["bx3"] = linear_params(keys[8], 9, 9)
    params["we3"], params["be3"] = linear_params(keys[9], 2, 9)
    params["wo3"], params["bo3"] = linear_params(keys[10], 9, 4)
    # head
    params["w1"], params["b1"] = linear_params(keys[11], 24, 8)
    params["w2"], params["b2"] = linear_params(keys[12], 8, 4)

    WN, B = pack_params(params)

    out = jax.block_until_ready(net_forward(x, edge_attr, S, A, Q, WN, B))
    ref = jax.block_until_ready(ref_forward(x, edge_attr, S, A, params))

    assert out.shape == (n_graphs, 4)
    np.testing.assert_allclose(np.asarray(out), np.asarray(ref), rtol=1e-5, atol=1e-5)
    print("KERNEL_OK")
</pallas_src>

<mosaic_0001>
module attributes {stable_mosaic.version = 11 : i64} {
  func.func @net_kernel(%arg0: memref<12x1xf32, #tpu.memory_space<vmem>>, %arg1: memref<20x2xf32, #tpu.memory_space<vmem>>, %arg2: memref<20x12xf32, #tpu.memory_space<vmem>>, %arg3: memref<12x20xf32, #tpu.memory_space<vmem>>, %arg4: memref<12x12xf32, #tpu.memory_space<vmem>>, %arg5: memref<11x24x16xf32, #tpu.memory_space<vmem>>, %arg6: memref<11x16xf32, #tpu.memory_space<vmem>>, %arg7: memref<2x4xf32, #tpu.memory_space<vmem>>) attributes {dimension_semantics = [], scalar_prefetch = 0 : i64, scratch_operands = 0 : i64, tpu.core_type = #tpu.core_type<tc>} {
    %c0 = arith.constant 0 : index
    %c0_0 = arith.constant 0 : index
    %0 = vector.load %arg0[%c0, %c0_0] : memref<12x1xf32, #tpu.memory_space<vmem>>, vector<12x1xf32>
    %c0_1 = arith.constant 0 : index
    %c0_2 = arith.constant 0 : index
    %1 = vector.load %arg1[%c0_1, %c0_2] : memref<20x2xf32, #tpu.memory_space<vmem>>, vector<20x2xf32>
    %c0_3 = arith.constant 0 : index
    %c0_4 = arith.constant 0 : index
    %2 = vector.load %arg2[%c0_3, %c0_4] : memref<20x12xf32, #tpu.memory_space<vmem>>, vector<20x12xf32>
    %c0_5 = arith.constant 0 : index
    %c0_6 = arith.constant 0 : index
    %3 = vector.load %arg3[%c0_5, %c0_6] : memref<12x20xf32, #tpu.memory_space<vmem>>, vector<12x20xf32>
    %c0_7 = arith.constant 0 : index
    %c0_8 = arith.constant 0 : index
    %4 = vector.load %arg4[%c0_7, %c0_8] : memref<12x12xf32, #tpu.memory_space<vmem>>, vector<12x12xf32>
    %c0_9 = arith.constant 0 : index
    %c0_10 = arith.constant 0 : index
    %c0_11 = arith.constant 0 : index
    %5 = vector.load %arg5[%c0_9, %c0_10, %c0_11] : memref<11x24x16xf32, #tpu.memory_space<vmem>>, vector<11x24x16xf32>
    %c0_12 = arith.constant 0 : index
    %c0_13 = arith.constant 0 : index
    %6 = vector.load %arg6[%c0_12, %c0_13] : memref<11x16xf32, #tpu.memory_space<vmem>>, vector<11x16xf32>
    %7 = vector.extract_strided_slice %5 {offsets = [0, 0, 0], sizes = [1, 1, 9], strides = [1, 1, 1]} : vector<11x24x16xf32> to vector<1x1x9xf32>
    %8 = vector.shape_cast %7 : vector<1x1x9xf32> to vector<1x9xf32>
    %9 = vector.extract_strided_slice %6 {offsets = [0, 0], sizes = [1, 9], strides = [1, 1]} : vector<11x16xf32> to vector<1x9xf32>
    %10 = vector.extract_strided_slice %5 {offsets = [1, 0, 0], sizes = [1, 9, 9], strides = [1, 1, 1]} : vector<11x24x16xf32> to vector<1x9x9xf32>
    %11 = vector.shape_cast %10 : vector<1x9x9xf32> to vector<9x9xf32>
    %12 = vector.extract_strided_slice %6 {offsets = [1, 0], sizes = [1, 9], strides = [1, 1]} : vector<11x16xf32> to vector<1x9xf32>
    %13 = vector.extract_strided_slice %5 {offsets = [2, 0, 0], sizes = [1, 9, 9], strides = [1, 1, 1]} : vector<11x24x16xf32> to vector<1x9x9xf32>
    %14 = vector.shape_cast %13 : vector<1x9x9xf32> to vector<9x9xf32>
    %15 = vector.extract_strided_slice %6 {offsets = [2, 0], sizes = [1, 9], strides = [1, 1]} : vector<11x16xf32> to vector<1x9xf32>
    %16 = vector.extract_strided_slice %5 {offsets = [3, 0, 0], sizes = [1, 9, 9], strides = [1, 1, 1]} : vector<11x24x16xf32> to vector<1x9x9xf32>
    %17 = vector.shape_cast %16 : vector<1x9x9xf32> to vector<9x9xf32>
    %18 = vector.extract_strided_slice %6 {offsets = [6, 0], sizes = [1, 9], strides = [1, 1]} : vector<11x16xf32> to vector<1x9xf32>
    %19 = vector.extract_strided_slice %5 {offsets = [4, 0, 0], sizes = [1, 9, 9], strides = [1, 1, 1]} : vector<11x24x16xf32> to vector<1x9x9xf32>
    %20 = vector.shape_cast %19 : vector<1x9x9xf32> to vector<9x9xf32>
    %21 = vector.extract_strided_slice %6 {offsets = [7, 0], sizes = [1, 9], strides = [1, 1]} : vector<11x16xf32> to vector<1x9xf32>
    %22 = vector.extract_strided_slice %5 {offsets = [5, 0, 0], sizes = [1, 9, 4], strides = [1, 1, 1]} : vector<11x24x16xf32> to vector<1x9x4xf32>
    %23 = vector.shape_cast %22 : vector<1x9x4xf32> to vector<9x4xf32>
    %24 = vector.extract_strided_slice %6 {offsets = [8, 0], sizes = [1, 4], strides = [1, 1]} : vector<11x16xf32> to vector<1x4xf32>
    %25 = vector.extract_strided_slice %5 {offsets = [6, 0, 0], sizes = [1, 2, 9], strides = [1, 1, 1]} : vector<11x24x16xf32> to vector<1x2x9xf32>
    %26 = vector.shape_cast %25 : vector<1x2x9xf32> to vector<2x9xf32>
    %27 = vector.extract_strided_slice %6 {offsets = [3, 0], sizes = [1, 9], strides = [1, 1]} : vector<11x16xf32> to vector<1x9xf32>
    %28 = vector.extract_strided_slice %5 {offsets = [7, 0, 0], sizes = [1, 2, 9], strides = [1, 1, 1]} : vector<11x24x16xf32> to vector<1x2x9xf32>
    %29 = vector.shape_cast %28 : vector<1x2x9xf32> to vector<2x9xf32>
    %30 = vector.extract_strided_slice %6 {offsets = [4, 0], sizes = [1, 9], strides = [1, 1]} : vector<11x16xf32> to vector<1x9xf32>
    %31 = vector.extract_strided_slice %5 {offsets = [8, 0, 0], sizes = [1, 2, 9], strides = [1, 1, 1]} : vector<11x24x16xf32> to vector<1x2x9xf32>
    %32 = vector.shape_cast %31 : vector<1x2x9xf32> to vector<2x9xf32>
    %33 = vector.extract_strided_slice %6 {offsets = [5, 0], sizes = [1, 9], strides = [1, 1]} : vector<11x16xf32> to vector<1x9xf32>
    %34 = vector.extract_strided_slice %5 {offsets = [9, 0, 0], sizes = [1, 24, 8], strides = [1, 1, 1]} : vector<11x24x16xf32> to vector<1x24x8xf32>
    %35 = vector.shape_cast %34 : vector<1x24x8xf32> to vector<24x8xf32>
    %36 = vector.extract_strided_slice %6 {offsets = [9, 0], sizes = [1, 8], strides = [1, 1]} : vector<11x16xf32> to vector<1x8xf32>
    %37 = vector.extract_strided_slice %5 {offsets = [10, 0, 0], sizes = [1, 8, 4], strides = [1, 1, 1]} : vector<11x24x16xf32> to vector<1x8x4xf32>
    %38 = vector.shape_cast %37 : vector<1x8x4xf32> to vector<8x4xf32>
    %39 = vector.extract_strided_slice %6 {offsets = [10, 0], sizes = [1, 4], strides = [1, 1]} : vector<11x16xf32> to vector<1x4xf32>
    %40 = vector.broadcast %0 : vector<12x1xf32> to vector<12x9xf32>
    %41 = vector.broadcast %8 : vector<1x9xf32> to vector<12x9xf32>
    %42 = arith.mulf %40, %41 : vector<12x9xf32>
    %43 = vector.broadcast %9 : vector<1x9xf32> to vector<12x9xf32>
    %44 = arith.addf %42, %43 : vector<12x9xf32>
    %45 = vector.extract_strided_slice %1 {offsets = [0, 0], sizes = [20, 1], strides = [1, 1]} : vector<20x2xf32> to vector<20x1xf32>
    %46 = vector.extract_strided_slice %26 {offsets = [0, 0], sizes = [1, 9], strides = [1, 1]} : vector<2x9xf32> to vector<1x9xf32>
    %47 = vector.broadcast %45 : vector<20x1xf32> to vector<20x9xf32>
    %48 = vector.broadcast %46 : vector<1x9xf32> to vector<20x9xf32>
    %49 = arith.mulf %47, %48 : vector<20x9xf32>
    %50 = vector.extract_strided_slice %1 {offsets = [0, 1], sizes = [20, 1], strides = [1, 1]} : vector<20x2xf32> to vector<20x1xf32>
    %51 = vector.extract_strided_slice %26 {offsets = [1, 0], sizes = [1, 9], strides = [1, 1]} : vector<2x9xf32> to vector<1x9xf32>
    %52 = vector.broadcast %50 : vector<20x1xf32> to vector<20x9xf32>
    %53 = vector.broadcast %51 : vector<1x9xf32> to vector<20x9xf32>
    %54 = arith.mulf %52, %53 : vector<20x9xf32>
    %55 = arith.addf %49, %54 : vector<20x9xf32>
    %56 = vector.broadcast %27 : vector<1x9xf32> to vector<20x9xf32>
    %57 = arith.addf %55, %56 : vector<20x9xf32>
    %cst = arith.constant dense<0.000000e+00> : vector<20x9xf32>
    %58 = tpu.matmul %2, %44, %cst {dimension_numbers = #tpu.dot_dimension_numbers<[1], [0], [0], [1], [0, 0, 1, 1], [], []>} : vector<20x12xf32>, vector<12x9xf32>, vector<20x9xf32> -> vector<20x9xf32>
    %59 = arith.mulf %58, %57 : vector<20x9xf32>
    %cst_14 = arith.constant dense<0.000000e+00> : vector<12x9xf32>
    %60 = tpu.matmul %3, %59, %cst_14 {dimension_numbers = #tpu.dot_dimension_numbers<[1], [0], [0], [1], [0, 0, 1, 1], [], []>} : vector<12x20xf32>, vector<20x9xf32>, vector<12x9xf32> -> vector<12x9xf32>
    %cst_15 = arith.constant dense<0.000000e+00> : vector<12x9xf32>
    %61 = tpu.matmul %60, %17, %cst_15 {dimension_numbers = #tpu.dot_dimension_numbers<[1], [0], [0], [1], [0, 0, 1, 1], [], []>} : vector<12x9xf32>, vector<9x9xf32>, vector<12x9xf32> -> vector<12x9xf32>
    %62 = vector.broadcast %18 : vector<1x9xf32> to vector<12x9xf32>
    %63 = arith.addf %61, %62 : vector<12x9xf32>
    %cst_16 = arith.constant 0.000000e+00 : f32
    %64 = vector.broadcast %cst_16 : f32 to vector<12x9xf32>
    %65 = arith.maximumf %63, %64 : vector<12x9xf32>
    %cst_17 = arith.constant dense<0.000000e+00> : vector<12x9xf32>
    %66 = tpu.matmul %65, %11, %cst_17 {dimension_numbers = #tpu.dot_dimension_numbers<[1], [0], [0], [1], [0, 0, 1, 1], [], []>} : vector<12x9xf32>, vector<9x9xf32>, vector<12x9xf32> -> vector<12x9xf32>
    %67 = vector.broadcast %12 : vector<1x9xf32> to vector<12x9xf32>
    %68 = arith.addf %66, %67 : vector<12x9xf32>
    %69 = vector.extract_strided_slice %1 {offsets = [0, 0], sizes = [20, 1], strides = [1, 1]} : vector<20x2xf32> to vector<20x1xf32>
    %70 = vector.extract_strided_slice %29 {offsets = [0, 0], sizes = [1, 9], strides = [1, 1]} : vector<2x9xf32> to vector<1x9xf32>
    %71 = vector.broadcast %69 : vector<20x1xf32> to vector<20x9xf32>
    %72 = vector.broadcast %70 : vector<1x9xf32> to vector<20x9xf32>
    %73 = arith.mulf %71, %72 : vector<20x9xf32>
    %74 = vector.extract_strided_slice %1 {offsets = [0, 1], sizes = [20, 1], strides = [1, 1]} : vector<20x2xf32> to vector<20x1xf32>
    %75 = vector.extract_strided_slice %29 {offsets = [1, 0], sizes = [1, 9], strides = [1, 1]} : vector<2x9xf32> to vector<1x9xf32>
    %76 = vector.broadcast %74 : vector<20x1xf32> to vector<20x9xf32>
    %77 = vector.broadcast %75 : vector<1x9xf32> to vector<20x9xf32>
    %78 = arith.mulf %76, %77 : vector<20x9xf32>
    %79 = arith.addf %73, %78 : vector<20x9xf32>
    %80 = vector.broadcast %30 : vector<1x9xf32> to vector<20x9xf32>
    %81 = arith.addf %79, %80 : vector<20x9xf32>
    %cst_18 = arith.constant dense<0.000000e+00> : vector<20x9xf32>
    %82 = tpu.matmul %2, %68, %cst_18 {dimension_numbers = #tpu.dot_dimension_numbers<[1], [0], [0], [1], [0, 0, 1, 1], [], []>} : vector<20x12xf32>, vector<12x9xf32>, vector<20x9xf32> -> vector<20x9xf32>
    %83 = arith.mulf %82, %81 : vector<20x9xf32>
    %cst_19 = arith.constant dense<0.000000e+00> : vector<12x9xf32>
    %84 = tpu.matmul %3, %83, %cst_19 {dimension_numbers = #tpu.dot_dimension_numbers<[1], [0], [0], [1], [0, 0, 1, 1], [], []>} : vector<12x20xf32>, vector<20x9xf32>, vector<12x9xf32> -> vector<12x9xf32>
    %cst_20 = arith.constant dense<0.000000e+00> : vector<12x9xf32>
    %85 = tpu.matmul %84, %20, %cst_20 {dimension_numbers = #tpu.dot_dimension_numbers<[1], [0], [0], [1], [0, 0, 1, 1], [], []>} : vector<12x9xf32>, vector<9x9xf32>, vector<12x9xf32> -> vector<12x9xf32>
    %86 = vector.broadcast %21 : vector<1x9xf32> to vector<12x9xf32>
    %87 = arith.addf %85, %86 : vector<12x9xf32>
    %cst_21 = arith.constant 0.000000e+00 : f32
    %88 = vector.broadcast %cst_21 : f32 to vector<12x9xf32>
    %89 = arith.maximumf %87, %88 : vector<12x9xf32>
    %cst_22 = arith.constant dense<0.000000e+00> : vector<12x9xf32>
    %90 = tpu.matmul %89, %14, %cst_22 {dimension_numbers = #tpu.dot_dimension_numbers<[1], [0], [0], [1], [0, 0, 1, 1], [], []>} : vector<12x9xf32>, vector<9x9xf32>, vector<12x9xf32> -> vector<12x9xf32>
    %91 = vector.broadcast %15 : vector<1x9xf32> to vector<12x9xf32>
    %92 = arith.addf %90, %91 : vector<12x9xf32>
    %93 = vector.extract_strided_slice %1 {offsets = [0, 0], sizes = [20, 1], strides = [1, 1]} : vector<20x2xf32> to vector<20x1xf32>
    %94 = vector.extract_strided_slice %32 {offsets = [0, 0], sizes = [1, 9], strides = [1, 1]} : vector<2x9xf32> to vector<1x9xf32>
    %95 = vector.broadcast %93 : vector<20x1xf32> to vector<20x9xf32>
    %96 = vector.broadcast %94 : vector<1x9xf32> to vector<20x9xf32>
    %97 = arith.mulf %95, %96 : vector<20x9xf32>
    %98 = vector.extract_strided_slice %1 {offsets = [0, 1], sizes = [20, 1], strides = [1, 1]} : vector<20x2xf32> to vector<20x1xf32>
    %99 = vector.extract_strided_slice %32 {offsets = [1, 0], sizes = [1, 9], strides = [1, 1]} : vector<2x9xf32> to vector<1x9xf32>
    %100 = vector.broadcast %98 : vector<20x1xf32> to vector<20x9xf32>
    %101 = vector.broadcast %99 : vector<1x9xf32> to vector<20x9xf32>
    %102 = arith.mulf %100, %101 : vector<20x9xf32>
    %103 = arith.addf %97, %102 : vector<20x9xf32>
    %104 = vector.broadcast %33 : vector<1x9xf32> to vector<20x9xf32>
    %105 = arith.addf %103, %104 : vector<20x9xf32>
    %cst_23 = arith.constant dense<0.000000e+00> : vector<20x9xf32>
    %106 = tpu.matmul %2, %92, %cst_23 {dimension_numbers = #tpu.dot_dimension_numbers<[1], [0], [0], [1], [0, 0, 1, 1], [], []>} : vector<20x12xf32>, vector<12x9xf32>, vector<20x9xf32> -> vector<20x9xf32>
    %107 = arith.mulf %106, %105 : vector<20x9xf32>
    %cst_24 = arith.constant dense<0.000000e+00> : vector<12x9xf32>
    %108 = tpu.matmul %3, %107, %cst_24 {dimension_numbers = #tpu.dot_dimension_numbers<[1], [0], [0], [1], [0, 0, 1, 1], [], []>} : vector<12x20xf32>, vector<20x9xf32>, vector<12x9xf32> -> vector<12x9xf32>
    %cst_25 = arith.constant dense<0.000000e+00> : vector<12x4xf32>
    %109 = tpu.matmul %108, %23, %cst_25 {dimension_numbers = #tpu.dot_dimension_numbers<[1], [0], [0], [1], [0, 0, 1, 1], [], []>} : vector<12x9xf32>, vector<9x4xf32>, vector<12x4xf32> -> vector<12x4xf32>
    %110 = vector.broadcast %24 : vector<1x4xf32> to vector<12x4xf32>
    %111 = arith.addf %109, %110 : vector<12x4xf32>
    %cst_26 = arith.constant 0.000000e+00 : f32
    %112 = vector.broadcast %cst_26 : f32 to vector<12x4xf32>
    %113 = arith.maximumf %111, %112 : vector<12x4xf32>
    %cst_27 = arith.constant dense<0.000000e+00> : vector<12x4xf32>
    %114 = tpu.matmul %4, %113, %cst_27 {dimension_numbers = #tpu.dot_dimension_numbers<[1], [0], [0], [1], [0, 0, 1, 1], [], []>} : vector<12x12xf32>, vector<12x4xf32>, vector<12x4xf32> -> vector<12x4xf32>
    %cst_28 = arith.constant 0.000000e+00 : f32
    %115 = vector.broadcast %cst_28 : f32 to vector<2x8xf32>
    %116 = vector.extract_strided_slice %114 {offsets = [0, 0], sizes = [2, 4], strides = [1, 1]} : vector<12x4xf32> to vector<2x4xf32>
    %117 = vector.extract_strided_slice %35 {offsets = [0, 0], sizes = [4, 8], strides = [1, 1]} : vector<24x8xf32> to vector<4x8xf32>
    %118 = vector.extract_strided_slice %116 {offsets = [0, 0], sizes = [2, 1], strides = [1, 1]} : vector<2x4xf32> to vector<2x1xf32>
    %119 = vector.extract_strided_slice %117 {offsets = [0, 0], sizes = [1, 8], strides = [1, 1]} : vector<4x8xf32> to vector<1x8xf32>
    %120 = vector.broadcast %118 : vector<2x1xf32> to vector<2x8xf32>
    %121 = vector.broadcast %119 : vector<1x8xf32> to vector<2x8xf32>
    %122 = arith.mulf %120, %121 : vector<2x8xf32>
    %123 = vector.extract_strided_slice %116 {offsets = [0, 1], sizes = [2, 1], strides = [1, 1]} : vector<2x4xf32> to vector<2x1xf32>
    %124 = vector.extract_strided_slice %117 {offsets = [1, 0], sizes = [1, 8], strides = [1, 1]} : vector<4x8xf32> to vector<1x8xf32>
    %125 = vector.broadcast %123 : vector<2x1xf32> to vector<2x8xf32>
    %126 = vector.broadcast %124 : vector<1x8xf32> to vector<2x8xf32>
    %127 = arith.mulf %125, %126 : vector<2x8xf32>
    %128 = arith.addf %122, %127 : vector<2x8xf32>
    %129 = vector.extract_strided_slice %116 {offsets = [0, 2], sizes = [2, 1], strides = [1, 1]} : vector<2x4xf32> to vector<2x1xf32>
    %130 = vector.extract_strided_slice %117 {offsets = [2, 0], sizes = [1, 8], strides = [1, 1]} : vector<4x8xf32> to vector<1x8xf32>
    %131 = vector.broadcast %129 : vector<2x1xf32> to vector<2x8xf32>
    %132 = vector.broadcast %130 : vector<1x8xf32> to vector<2x8xf32>
    %133 = arith.mulf %131, %132 : vector<2x8xf32>
    %134 = arith.addf %128, %133 : vector<2x8xf32>
    %135 = vector.extract_strided_slice %116 {offsets = [0, 3], sizes = [2, 1], strides = [1, 1]} : vector<2x4xf32> to vector<2x1xf32>
    %136 = vector.extract_strided_slice %117 {offsets = [3, 0], sizes = [1, 8], strides = [1, 1]} : vector<4x8xf32> to vector<1x8xf32>
    %137 = vector.broadcast %135 : vector<2x1xf32> to vector<2x8xf32>
    %138 = vector.broadcast %136 : vector<1x8xf32> to vector<2x8xf32>
    %139 = arith.mulf %137, %138 : vector<2x8xf32>
    %140 = arith.addf %134, %139 : vector<2x8xf32>
    %141 = arith.addf %115, %140 : vector<2x8xf32>
    %142 = vector.extract_strided_slice %114 {offsets = [2, 0], sizes = [2, 4], strides = [1, 1]} : vector<12x4xf32> to vector<2x4xf32>
    %143 = vector.extract_strided_slice %35 {offsets = [4, 0], sizes = [4, 8], strides = [1, 1]} : vector<24x8xf32> to vector<4x8xf32>
    %144 = vector.extract_strided_slice %142 {offsets = [0, 0], sizes = [2, 1], strides = [1, 1]} : vector<2x4xf32> to vector<2x1xf32>
    %145 = vector.extract_strided_slice %143 {offsets = [0, 0], sizes = [1, 8], strides = [1, 1]} : vector<4x8xf32> to vector<1x8xf32>
    %146 = vector.broadcast %144 : vector<2x1xf32> to vector<2x8xf32>
    %147 = vector.broadcast %145 : vector<1x8xf32> to vector<2x8xf32>
    %148 = arith.mulf %146, %147 : vector<2x8xf32>
    %149 = vector.extract_strided_slice %142 {offsets = [0, 1], sizes = [2, 1], strides = [1, 1]} : vector<2x4xf32> to vector<2x1xf32>
    %150 = vector.extract_strided_slice %143 {offsets = [1, 0], sizes = [1, 8], strides = [1, 1]} : vector<4x8xf32> to vector<1x8xf32>
    %151 = vector.broadcast %149 : vector<2x1xf32> to vector<2x8xf32>
    %152 = vector.broadcast %150 : vector<1x8xf32> to vector<2x8xf32>
    %153 = arith.mulf %151, %152 : vector<2x8xf32>
    %154 = arith.addf %148, %153 : vector<2x8xf32>
    %155 = vector.extract_strided_slice %142 {offsets = [0, 2], sizes = [2, 1], strides = [1, 1]} : vector<2x4xf32> to vector<2x1xf32>
    %156 = vector.extract_strided_slice %143 {offsets = [2, 0], sizes = [1, 8], strides = [1, 1]} : vector<4x8xf32> to vector<1x8xf32>
    %157 = vector.broadcast %155 : vector<2x1xf32> to vector<2x8xf32>
    %158 = vector.broadcast %156 : vector<1x8xf32> to vector<2x8xf32>
    %159 = arith.mulf %157, %158 : vector<2x8xf32>
    %160 = arith.addf %154, %159 : vector<2x8xf32>
    %161 = vector.extract_strided_slice %142 {offsets = [0, 3], sizes = [2, 1], strides = [1, 1]} : vector<2x4xf32> to vector<2x1xf32>
    %162 = vector.extract_strided_slice %143 {offsets = [3, 0], sizes = [1, 8], strides = [1, 1]} : vector<4x8xf32> to vector<1x8xf32>
    %163 = vector.broadcast %161 : vector<2x1xf32> to vector<2x8xf32>
    %164 = vector.broadcast %162 : vector<1x8xf32> to vector<2x8xf32>
    %165 = arith.mulf %163, %164 : vector<2x8xf32>
    %166 = arith.addf %160, %165 : vector<2x8xf32>
    %167 = arith.addf %141, %166 : vector<2x8xf32>
    %168 = vector.extract_strided_slice %114 {offsets = [4, 0], sizes = [2, 4], strides = [1, 1]} : vector<12x4xf32> to vector<2x4xf32>
    %169 = vector.extract_strided_slice %35 {offsets = [8, 0], sizes = [4, 8], strides = [1, 1]} : vector<24x8xf32> to vector<4x8xf32>
    %170 = vector.extract_strided_slice %168 {offsets = [0, 0], sizes = [2, 1], strides = [1, 1]} : vector<2x4xf32> to vector<2x1xf32>
    %171 = vector.extract_strided_slice %169 {offsets = [0, 0], sizes = [1, 8], strides = [1, 1]} : vector<4x8xf32> to vector<1x8xf32>
    %172 = vector.broadcast %170 : vector<2x1xf32> to vector<2x8xf32>
    %173 = vector.broadcast %171 : vector<1x8xf32> to vector<2x8xf32>
    %174 = arith.mulf %172, %173 : vector<2x8xf32>
    %175 = vector.extract_strided_slice %168 {offsets = [0, 1], sizes = [2, 1], strides = [1, 1]} : vector<2x4xf32> to vector<2x1xf32>
    %176 = vector.extract_strided_slice %169 {offsets = [1, 0], sizes = [1, 8], strides = [1, 1]} : vector<4x8xf32> to vector<1x8xf32>
    %177 = vector.broadcast %175 : vector<2x1xf32> to vector<2x8xf32>
    %178 = vector.broadcast %176 : vector<1x8xf32> to vector<2x8xf32>
    %179 = arith.mulf %177, %178 : vector<2x8xf32>
    %180 = arith.addf %174, %179 : vector<2x8xf32>
    %181 = vector.extract_strided_slice %168 {offsets = [0, 2], sizes = [2, 1], strides = [1, 1]} : vector<2x4xf32> to vector<2x1xf32>
    %182 = vector.extract_strided_slice %169 {offsets = [2, 0], sizes = [1, 8], strides = [1, 1]} : vector<4x8xf32> to vector<1x8xf32>
    %183 = vector.broadcast %181 : vector<2x1xf32> to vector<2x8xf32>
    %184 = vector.broadcast %182 : vector<1x8xf32> to vector<2x8xf32>
    %185 = arith.mulf %183, %184 : vector<2x8xf32>
    %186 = arith.addf %180, %185 : vector<2x8xf32>
    %187 = vector.extract_strided_slice %168 {offsets = [0, 3], sizes = [2, 1], strides = [1, 1]} : vector<2x4xf32> to vector<2x1xf32>
    %188 = vector.extract_strided_slice %169 {offsets = [3, 0], sizes = [1, 8], strides = [1, 1]} : vector<4x8xf32> to vector<1x8xf32>
    %189 = vector.broadcast %187 : vector<2x1xf32> to vector<2x8xf32>
    %190 = vector.broadcast %188 : vector<1x8xf32> to vector<2x8xf32>
    %191 = arith.mulf %189, %190 : vector<2x8xf32>
    %192 = arith.addf %186, %191 : vector<2x8xf32>
    %193 = arith.addf %167, %192 : vector<2x8xf32>
    %194 = vector.extract_strided_slice %114 {offsets = [6, 0], sizes = [2, 4], strides = [1, 1]} : vector<12x4xf32> to vector<2x4xf32>
    %195 = vector.extract_strided_slice %35 {offsets = [12, 0], sizes = [4, 8], strides = [1, 1]} : vector<24x8xf32> to vector<4x8xf32>
    %196 = vector.extract_strided_slice %194 {offsets = [0, 0], sizes = [2, 1], strides = [1, 1]} : vector<2x4xf32> to vector<2x1xf32>
    %197 = vector.extract_strided_slice %195 {offsets = [0, 0], sizes = [1, 8], strides = [1, 1]} : vector<4x8xf32> to vector<1x8xf32>
    %198 = vector.broadcast %196 : vector<2x1xf32> to vector<2x8xf32>
    %199 = vector.broadcast %197 : vector<1x8xf32> to vector<2x8xf32>
    %200 = arith.mulf %198, %199 : vector<2x8xf32>
    %201 = vector.extract_strided_slice %194 {offsets = [0, 1], sizes = [2, 1], strides = [1, 1]} : vector<2x4xf32> to vector<2x1xf32>
    %202 = vector.extract_strided_slice %195 {offsets = [1, 0], sizes = [1, 8], strides = [1, 1]} : vector<4x8xf32> to vector<1x8xf32>
    %203 = vector.broadcast %201 : vector<2x1xf32> to vector<2x8xf32>
    %204 = vector.broadcast %202 : vector<1x8xf32> to vector<2x8xf32>
    %205 = arith.mulf %203, %204 : vector<2x8xf32>
    %206 = arith.addf %200, %205 : vector<2x8xf32>
    %207 = vector.extract_strided_slice %194 {offsets = [0, 2], sizes = [2, 1], strides = [1, 1]} : vector<2x4xf32> to vector<2x1xf32>
    %208 = vector.extract_strided_slice %195 {offsets = [2, 0], sizes = [1, 8], strides = [1, 1]} : vector<4x8xf32> to vector<1x8xf32>
    %209 = vector.broadcast %207 : vector<2x1xf32> to vector<2x8xf32>
    %210 = vector.broadcast %208 : vector<1x8xf32> to vector<2x8xf32>
    %211 = arith.mulf %209, %210 : vector<2x8xf32>
    %212 = arith.addf %206, %211 : vector<2x8xf32>
    %213 = vector.extract_strided_slice %194 {offsets = [0, 3], sizes = [2, 1], strides = [1, 1]} : vector<2x4xf32> to vector<2x1xf32>
    %214 = vector.extract_strided_slice %195 {offsets = [3, 0], sizes = [1, 8], strides = [1, 1]} : vector<4x8xf32> to vector<1x8xf32>
    %215 = vector.broadcast %213 : vector<2x1xf32> to vector<2x8xf32>
    %216 = vector.broadcast %214 : vector<1x8xf32> to vector<2x8xf32>
    %217 = arith.mulf %215, %216 : vector<2x8xf32>
    %218 = arith.addf %212, %217 : vector<2x8xf32>
    %219 = arith.addf %193, %218 : vector<2x8xf32>
    %220 = vector.extract_strided_slice %114 {offsets = [8, 0], sizes = [2, 4], strides = [1, 1]} : vector<12x4xf32> to vector<2x4xf32>
    %221 = vector.extract_strided_slice %35 {offsets = [16, 0], sizes = [4, 8], strides = [1, 1]} : vector<24x8xf32> to vector<4x8xf32>
    %222 = vector.extract_strided_slice %220 {offsets = [0, 0], sizes = [2, 1], strides = [1, 1]} : vector<2x4xf32> to vector<2x1xf32>
    %223 = vector.extract_strided_slice %221 {offsets = [0, 0], sizes = [1, 8], strides = [1, 1]} : vector<4x8xf32> to vector<1x8xf32>
    %224 = vector.broadcast %222 : vector<2x1xf32> to vector<2x8xf32>
    %225 = vector.broadcast %223 : vector<1x8xf32> to vector<2x8xf32>
    %226 = arith.mulf %224, %225 : vector<2x8xf32>
    %227 = vector.extract_strided_slice %220 {offsets = [0, 1], sizes = [2, 1], strides = [1, 1]} : vector<2x4xf32> to vector<2x1xf32>
    %228 = vector.extract_strided_slice %221 {offsets = [1, 0], sizes = [1, 8], strides = [1, 1]} : vector<4x8xf32> to vector<1x8xf32>
    %229 = vector.broadcast %227 : vector<2x1xf32> to vector<2x8xf32>
    %230 = vector.broadcast %228 : vector<1x8xf32> to vector<2x8xf32>
    %231 = arith.mulf %229, %230 : vector<2x8xf32>
    %232 = arith.addf %226, %231 : vector<2x8xf32>
    %233 = vector.extract_strided_slice %220 {offsets = [0, 2], sizes = [2, 1], strides = [1, 1]} : vector<2x4xf32> to vector<2x1xf32>
    %234 = vector.extract_strided_slice %221 {offsets = [2, 0], sizes = [1, 8], strides = [1, 1]} : vector<4x8xf32> to vector<1x8xf32>
    %235 = vector.broadcast %233 : vector<2x1xf32> to vector<2x8xf32>
    %236 = vector.broadcast %234 : vector<1x8xf32> to vector<2x8xf32>
    %237 = arith.mulf %235, %236 : vector<2x8xf32>
    %238 = arith.addf %232, %237 : vector<2x8xf32>
    %239 = vector.extract_strided_slice %220 {offsets = [0, 3], sizes = [2, 1], strides = [1, 1]} : vector<2x4xf32> to vector<2x1xf32>
    %240 = vector.extract_strided_slice %221 {offsets = [3, 0], sizes = [1, 8], strides = [1, 1]} : vector<4x8xf32> to vector<1x8xf32>
    %241 = vector.broadcast %239 : vector<2x1xf32> to vector<2x8xf32>
    %242 = vector.broadcast %240 : vector<1x8xf32> to vector<2x8xf32>
    %243 = arith.mulf %241, %242 : vector<2x8xf32>
    %244 = arith.addf %238, %243 : vector<2x8xf32>
    %245 = arith.addf %219, %244 : vector<2x8xf32>
    %246 = vector.extract_strided_slice %114 {offsets = [10, 0], sizes = [2, 4], strides = [1, 1]} : vector<12x4xf32> to vector<2x4xf32>
    %247 = vector.extract_strided_slice %35 {offsets = [20, 0], sizes = [4, 8], strides = [1, 1]} : vector<24x8xf32> to vector<4x8xf32>
    %248 = vector.extract_strided_slice %246 {offsets = [0, 0], sizes = [2, 1], strides = [1, 1]} : vector<2x4xf32> to vector<2x1xf32>
    %249 = vector.extract_strided_slice %247 {offsets = [0, 0], sizes = [1, 8], strides = [1, 1]} : vector<4x8xf32> to vector<1x8xf32>
    %250 = vector.broadcast %248 : vector<2x1xf32> to vector<2x8xf32>
    %251 = vector.broadcast %249 : vector<1x8xf32> to vector<2x8xf32>
    %252 = arith.mulf %250, %251 : vector<2x8xf32>
    %253 = vector.extract_strided_slice %246 {offsets = [0, 1], sizes = [2, 1], strides = [1, 1]} : vector<2x4xf32> to vector<2x1xf32>
    %254 = vector.extract_strided_slice %247 {offsets = [1, 0], sizes = [1, 8], strides = [1, 1]} : vector<4x8xf32> to vector<1x8xf32>
    %255 = vector.broadcast %253 : vector<2x1xf32> to vector<2x8xf32>
    %256 = vector.broadcast %254 : vector<1x8xf32> to vector<2x8xf32>
    %257 = arith.mulf %255, %256 : vector<2x8xf32>
    %258 = arith.addf %252, %257 : vector<2x8xf32>
    %259 = vector.extract_strided_slice %246 {offsets = [0, 2], sizes = [2, 1], strides = [1, 1]} : vector<2x4xf32> to vector<2x1xf32>
    %260 = vector.extract_strided_slice %247 {offsets = [2, 0], sizes = [1, 8], strides = [1, 1]} : vector<4x8xf32> to vector<1x8xf32>
    %261 = vector.broadcast %259 : vector<2x1xf32> to vector<2x8xf32>
    %262 = vector.broadcast %260 : vector<1x8xf32> to vector<2x8xf32>
    %263 = arith.mulf %261, %262 : vector<2x8xf32>
    %264 = arith.addf %258, %263 : vector<2x8xf32>
    %265 = vector.extract_strided_slice %246 {offsets = [0, 3], sizes = [2, 1], strides = [1, 1]} : vector<2x4xf32> to vector<2x1xf32>
    %266 = vector.extract_strided_slice %247 {offsets = [3, 0], sizes = [1, 8], strides = [1, 1]} : vector<4x8xf32> to vector<1x8xf32>
    %267 = vector.broadcast %265 : vector<2x1xf32> to vector<2x8xf32>
    %268 = vector.broadcast %266 : vector<1x8xf32> to vector<2x8xf32>
    %269 = arith.mulf %267, %268 : vector<2x8xf32>
    %270 = arith.addf %264, %269 : vector<2x8xf32>
    %271 = arith.addf %245, %270 : vector<2x8xf32>
    %272 = vector.broadcast %36 : vector<1x8xf32> to vector<2x8xf32>
    %273 = arith.addf %271, %272 : vector<2x8xf32>
    %cst_29 = arith.constant 0.000000e+00 : f32
    %274 = vector.broadcast %cst_29 : f32 to vector<2x8xf32>
    %275 = arith.maximumf %273, %274 : vector<2x8xf32>
    %cst_30 = arith.constant dense<0.000000e+00> : vector<2x4xf32>
    %276 = tpu.matmul %275, %38, %cst_30 {dimension_numbers = #tpu.dot_dimension_numbers<[1], [0], [0], [1], [0, 0, 1, 1], [], []>} : vector<2x8xf32>, vector<8x4xf32>, vector<2x4xf32> -> vector<2x4xf32>
    %277 = vector.broadcast %39 : vector<1x4xf32> to vector<2x4xf32>
    %278 = arith.addf %276, %277 : vector<2x4xf32>
    %cst_31 = arith.constant dense<0xFF800000> : vector<2xf32>
    %279 = vector.multi_reduction <maximumf>, %278, %cst_31 [1] : vector<2x4xf32> to vector<2xf32>
    %280 = vector.shape_cast %279 : vector<2xf32> to vector<2x1xf32>
    %281 = vector.broadcast %280 : vector<2x1xf32> to vector<2x4xf32>
    %282 = arith.subf %278, %281 : vector<2x4xf32>
    %283 = math.exp %282 : vector<2x4xf32>
    %cst_32 = arith.constant dense<0.000000e+00> : vector<2xf32>
    %284 = vector.multi_reduction <add>, %283, %cst_32 [1] : vector<2x4xf32> to vector<2xf32>
    %285 = vector.shape_cast %284 : vector<2xf32> to vector<2x1xf32>
    %286 = math.log %285 : vector<2x1xf32>
    %287 = vector.broadcast %286 : vector<2x1xf32> to vector<2x4xf32>
    %288 = arith.subf %282, %287 : vector<2x4xf32>
    %c0_33 = arith.constant 0 : index
    %c0_34 = arith.constant 0 : index
    %289 = vector.load %arg7[%c0_33, %c0_34] : memref<2x4xf32, #tpu.memory_space<vmem>>, vector<2x4xf32>
    tpu.vector_store %arg7[%c0_33, %c0_34], %288 {strides = array<i32>} : memref<2x4xf32, #tpu.memory_space<vmem>>, vector<2x4xf32>,
    return
  }
}

</mosaic_0001>

<bundles_post_ra>
// kernel: tpu_custom_call.1
= control target key start
LH: loop header
LB: loop body
LE: loop exit
PB: predicated region body
PF: predicated region fallthrough
CT: control target
= control target key end

     0   :  { %v1777_v2 = vmov 0   ;;  %v1778_v4 = vmov 0.0   ;;  %s2154_s0 = inlined_call_operand.vmem [shape: f32[12,1], index: 0, kind: input, shape index: {}]   ;;  %s2155_s1 = inlined_call_operand.vmem [shape: f32[20,2], index: 1, kind: input, shape index: {}]   ;;  %s2156_s2 = inlined_call_operand.vmem [shape: f32[20,12], index: 2, kind: input, shape index: {}]   ;;  %s2157_s3 = inlined_call_operand.vmem [shape: f32[12,20], index: 3, kind: input, shape index: {}]   ;;  %s2158_s4 = inlined_call_operand.vmem [shape: f32[12,12], index: 4, kind: input, shape index: {}]   ;;  %s2159_s5 = inlined_call_operand.vmem [shape: f32[11,24,16], index: 5, kind: input, shape index: {}]   ;;  %s2160_s6 = inlined_call_operand.vmem [shape: f32[11,16], index: 6, kind: input, shape index: {}]   ;;  %s2161_s7 = inlined_call_operand.hbm [shape: f32[2,4], index: 7, kind: output, shape index: {}]  }
   0x1   :  { %v31_v0 = vld [vmem:[%s2155_s1 + $0x10] sm:$0xf]  ;;  %v28_v1 = vld [vmem:[%s2154_s0 + $0x8] sm:$0xf]  ;;  %1741 = vset.pattern.permute.xlu1 %v1777_v2  ;;  %1740 = vset.pattern.permute.xlu0 %v1777_v2  ;;  %v27_v3 = vld [vmem:[%s2154_s0] sm:$0xff] }
   0x2   :  { %93 = vperm.xlu1 %1741, %v31_v0   ;;  %66 = vperm.xlu0 %1740, %v28_v1  }
   0x3   :  { %1620 = vmatprep.subr.mxu0 %v1778_v4 }
   0x4   :  { %12 = vsyncpa [#allocation3], 0  ;;  %v1779_v5 = vmov 1   ;;  %v30_v6 = vld [vmem:[%s2155_s1 + $0x8] sm:$0xff]  ;;  %vm1780_vm0 = vmmov 0   ;;  %v29_v7 = vld [vmem:[%s2155_s1] sm:$0xff]  ;;  %v69_v8 = vlaneseq }
   0x5   :  { %1624 = vmatprep.mubr.msk.f32.mxu0 %vm1780_vm0, %v1778_v4  ;;  %v39_v11 = vld [vmem:[%s2159_s5] sm:$0xff]  ;;  %v51_v18 = vld [vmem:[%s2159_s5 + $0xa8] sm:$0xff]  ;;  %vm142_vm1 = vcmask 1043456   ;;  %vm132_vm2 = vcmask 97280   ;;  %v1912_v40 = vld [vmem:[%s2156_s2 + $0x10] sm:$0xf] }
   0x6   :  { %1742 = vset.pattern.permute.xlu1 %v1779_v5  ;;  %61 = vperm.xlu0 %1740, %v27_v3   ;;  %v1843_v9 = vshrl.u32 %v69_v8, 7  ;;  %v1854_v12 = vld [vmem:[%s2160_s6] sm:$0xff]  ;;  %v1899_v37 = vld [vmem:[%s2156_s2 + $0x8] sm:$0xff]  ;;  %vm229_vm3 = vcmask 162816   ;;  %v50_v48 = vld [vmem:[%s2159_s5 + $0x90] sm:$0xff]  ;;  %vm325_vm4 = vcmask 1040384  }
   0x7   :  { %112 = vperm.xlu1 %1742, %v31_v0   ;;  %v52_v19 = vld [vmem:[%s2159_s5 + $0xc0] sm:$0xff]  ;;  %vm318_vm5 = vcmask 72704   ;;  %vm1422_vm6 = vcmask 64512   ;;  %vm1496_vm7 = vcmask 25600  }
   0x8   :  { %v1846_v10 = vsub.s32 0, %v1843_v9  ;;  %v1866_v20 = vsub.s32 1, %v1843_v9  ;;  %v1885_v30 = vld [vmem:[%s2156_s2] sm:$0xff]  ;;  %v1943_v58 = vsub.s32 3, %v1843_v9 }
   0x9   :  { %v1929_v47 = vld [vmem:[%s2157_s3] sm:$0xff] }
   0xa   :  { %88 = vperm.xlu0 %1740, %v30_v6   ;;  %v72_v13 = vrot.slane %v39_v11, %v1846_v10  ;;  %v78_v14 = vrot.slane %v1854_v12, %v1846_v10  ;;  %v1869_v23 = vrot.slane %v51_v18, %v1846_v10  ;;  %v1872_v24 = vrot.slane %v52_v19, %v1846_v10 }
   0xb   :  { %108 = vperm.xlu1 %1742, %v30_v6   ;;  %v1876_v27 = vrot.slane %v51_v18, %v1866_v20  ;;  %v1879_v28 = vrot.slane %v52_v19, %v1866_v20  ;;  %1639 = vmatprep.mubr.msk.f32.mxu1 %vm229_vm3, %v1929_v47  ;;  %v99_v49 = vrot.slane %v50_v48, %v1846_v10  ;;  %v45_v18 = vld [vmem:[%s2159_s5 + $0x50] sm:$0xff]  ;;  %v44_v19 = vld [vmem:[%s2159_s5 + $0x48] sm:$0xff] }
   0xc   :  { %v118_v50 = vrot.slane %v50_v48, %v1866_v20  ;;  %v128_v0 = vrot.slane %v1854_v12, %v1943_v58 }
   0xe   :  { %83 = vperm.xlu0 %1740, %v29_v7  }
   0xf   :  { %104 = vperm.xlu1 %1742, %v29_v7  }
  0x13   :  { %1743 = vset.pattern.permute.xlu1 %v1777_v2 }
  0x7d   :  { %v67_v15 = vpop.permute.xlu0 %66  ;;  %v94_v16 = vpop.permute.xlu1 %93 }
  0x7e   :  { %v74_v17 = vmul.f32 %v72_v13, %v67_v15  ;;  %v500_v41 = vmul.f32 %v1869_v23, %v94_v16  ;;  %v866_v42 = vmul.f32 %v1872_v24, %v94_v16  ;;  %v102_v51 = vmul.f32 %v99_v49, %v94_v16 }
  0x80   :  { %v80_v21 = vadd.f32 %v78_v14, %v74_v17  ;;  %v1954_v17 = vld [vmem:[%s2157_s3 + $0x8] sm:$0xf] }
  0x81   :  { %v62_v22 = vpop.permute.xlu0 %61 }
  0x82   :  { %v73_v25 = vmul.f32 %v72_v13, %v62_v22  ;;  %v113_v26 = vpop.permute.xlu1 %112  ;;  %1621 = vmatpush3.msk.msra.mxu0 %vm142_vm1, %v80_v21 }
  0x83   :  { %1622 = vmatprep.subr.mxu0 %v1778_v4  ;;  %v507_v43 = vmul.f32 %v1876_v27, %v113_v26  ;;  %v873_v44 = vmul.f32 %v1879_v28, %v113_v26  ;;  %v121_v52 = vmul.f32 %v118_v50, %v113_v26  ;;  %v40_v26 = vld [vmem:[%s2159_s5 + $0x18] sm:$0xff] }
  0x84   :  { %v79_v29 = vadd.f32 %v78_v14, %v73_v25  ;;  %v41_v25 = vld [vmem:[%s2159_s5 + $0x20] sm:$0xff] }
  0x85   :  { %v89_v31 = vpop.permute.xlu0 %88  ;;  %v1922_v45 = vadd.f32 %v507_v43, %v500_v41  ;;  %v1924_v46 = vadd.f32 %v873_v44, %v866_v42  ;;  %v124_v62 = vadd.f32 %v121_v52, %v102_v51  ;;  %v409_v42 = vrot.slane %v1854_v12, %v1866_v20 }
  0x86   :  { %v499_v32 = vmul.f32 %v1869_v23, %v89_v31  ;;  %v865_v33 = vmul.f32 %v1872_v24, %v89_v31  ;;  %v109_v34 = vpop.permute.xlu1 %108  ;;  %1623 = vmatpush3.msra.mxu0 %v79_v29  ;;  %v101_v56 = vmul.f32 %v99_v49, %v89_v31  ;;  %v1977_v29 = vsub.s32 6, %v1843_v9 }
  0x87   :  { %v506_v35 = vmul.f32 %v1876_v27, %v109_v34  ;;  %v872_v36 = vmul.f32 %v1879_v28, %v109_v34  ;;  %1625 = vmatmul.mubr.msk.f32.vlgmr.msra.gmra.mxu0 %vm132_vm2, %v1885_v30  ;;  %1656 = vmatprep.subr.mxu0 %v1778_v4  ;;  %v120_v57 = vmul.f32 %v118_v50, %v109_v34  ;;  %v2000_v51 = vsub.s32 4, %v1843_v9 }
  0x88   :  { %1627 = vmatprep.mubr.msk.f32.mxu0 %vm1780_vm0, %v1778_v4  ;;  %v131_v6 = vadd.f32 %v128_v0, %v124_v62  ;;  %v317_v31 = vrot.slane %v1854_v12, %v1977_v29 }
  0x89   :  { %v1901_v38 = vadd.f32 %v506_v35, %v499_v32  ;;  %v1903_v39 = vadd.f32 %v872_v36, %v865_v33  ;;  %v1938_v53 = vpop.permute.xlu0 %83  ;;  %v123_v1 = vadd.f32 %v120_v57, %v101_v56 }
  0x8a   :  { %v1940_v54 = vpop.permute.xlu1 %104  ;;  %v100_v60 = vmul.f32 %v99_v49, %v1938_v53 }
  0x8b   :  { %1628 = vmatmul.mubr.msk.f32.gmra.mxu0 %vm132_vm2, %v1899_v37  ;;  %v119_v61 = vmul.f32 %v118_v50, %v1940_v54  ;;  %v130_v8 = vadd.f32 %v128_v0, %v123_v1  ;;  %v505_v56 = vmul.f32 %v1876_v27, %v1940_v54  ;;  %v47_v27 = vld [vmem:[%s2159_s5 + $0x68] sm:$0xff] }
  0x8c   :  { %1630 = vmatprep.mubr.msk.f32.mxu0 %vm1780_vm0, %v1778_v4 }
  0x8d   :  { %v122_v3 = vadd.f32 %v119_v61, %v100_v60 }
  0x8f   :  { %1631 = vmatmul.mubr.msk.f32.gmra.mxu0 %vm132_vm2, %v1912_v40  ;;  %v129_v14 = vadd.f32 %v128_v0, %v122_v3 }
  0x90   :  { %1660 = vmatprep.mubr.msk.f32.mxu0 %vm1780_vm0, %v1778_v4 }
 0x147   :  { %v212_v55 = vpop.f32.mrf.mxu0 }
 0x148   :  { %v226_v16 = vmul.f32 %v212_v55, %v129_v14  ;;  %v498_v55 = vmul.f32 %v1869_v23, %v1938_v53 }
 0x149   :  { %v1626_v59 = vpop.f32.mrf.mxu0 }
 0x14a   :  { %v514_v59 = vrot.slane %v1854_v12, %v2000_v51  ;;  %v508_v61 = vadd.f32 %v505_v56, %v498_v55 }
 0x14b   :  { %v217_v63 = vpop.f32.mrf.mxu0 }
 0x14c   :  { %v227_v15 = vmul.f32 %v217_v63, %v130_v8  ;;  %v517_v62 = vadd.f32 %v514_v59, %v1922_v45  ;;  %v516_v0 = vadd.f32 %v514_v59, %v1901_v38  ;;  %v515_v3 = vadd.f32 %v514_v59, %v508_v61  ;;  %v46_v38 = vld [vmem:[%s2159_s5 + $0x60] sm:$0xff]  ;;  %v43_v8 = vld [vmem:[%s2159_s5 + $0x38] sm:$0xff] }
 0x14d   :  { %v1629_v2 = vpop.f32.mrf.mxu0 }
 0x14f   :  { %v222_v7 = vpop.f32.mrf.mxu0 }
 0x150   :  { %v228_v11 = vmul.f32 %v222_v7, %v131_v6 }
 0x151   :  { %v1632_v13 = vpop.f32.mrf.mxu0 }
 0x152   :  { %1633 = vmatprep.subr.msk.mxu1 %vm142_vm1, %v228_v11  ;;  %v2036_v13 = vsub.s32 7, %v1843_v9 }
 0x153   :  { %1634 = vmatpush3.msk.msra.mxu1 %vm142_vm1, %v228_v11  ;;  %v42_v11 = vld [vmem:[%s2159_s5 + $0x30] sm:$0xff] }
 0x154   :  { %1635 = vmatprep.subr.mxu1 %v227_v15  ;;  %v685_v14 = vrot.slane %v1854_v12, %v2036_v13 }
 0x155   :  { %1636 = vmatpush3.msra.mxu1 %v227_v15 }
 0x156   :  { %1637 = vmatprep.subr.mxu1 %v226_v16 }
 0x157   :  { %1638 = vmatpush3.msra.mxu1 %v226_v16 }
 0x158   :  { %1640 = vmatmul.mubr.msk.f32.vlgmr.msra.gmra.mxu1 %vm229_vm3, %v1954_v17  ;;  %1642 = vmatprep.subr.msk.mxu1 %vm325_vm4, %v45_v18 }
 0x159   :  { %1643 = vmatpush3.msk.msra.mxu1 %vm325_vm4, %v45_v18 }
 0x15a   :  { %1644 = vmatprep.subr.mxu1 %v44_v19 }
 0x15b   :  { %1645 = vmatpush3.msra.mxu1 %v44_v19 }
 0x15c   :  { %1649 = vmatprep.subr.msk.mxu1 %vm325_vm4, %v41_v25 }
 0x218   :  { %v1641_v21 = vpop.f32.mrf.mxu1 }
 0x21a   :  { %v305_v22 = vpop.f32.mrf.mxu1 }
 0x21b   :  { %1646 = vmatprep.mubr.msk.f32.mxu1 %vm318_vm5, %v305_v22 }
 0x21c   :  { %1647 = vmatmul.mubr.msk.f32.vlgmr.msra.gmra.mxu1 %vm318_vm5, %v1641_v21 }
 0x21d   :  { %1650 = vmatpush3.msk.msra.mxu1 %vm325_vm4, %v41_v25  ;;  %v2045_v25 = vsub.s32 2, %v1843_v9 }
 0x21e   :  { %1651 = vmatprep.subr.mxu1 %v40_v26 }
 0x21f   :  { %1652 = vmatpush3.msra.mxu1 %v40_v26  ;;  %v775_v26 = vrot.slane %v1854_v12, %v2045_v25 }
 0x2dc   :  { %v1648_v32 = vpop.f32.mrf.mxu1 }
 0x2dd   :  { %v401_v33 = vadd.f32 %v1648_v32, %v317_v31 }
 0x2de   :  { %v395_v34 = vpop.f32.mrf.mxu1 }
 0x2df   :  { %v396_v35 = vadd.f32 %v395_v34, %v317_v31  ;;  %v405_v41 = vmax.f32 %v401_v33, 0.0 }
 0x2e1   :  { %v404_v36 = vmax.f32 %v396_v35, 0.0  ;;  %v2062_v35 = vsub.s32 5, %v1843_v9 }
 0x2e3   :  { %1653 = vmatprep.mubr.msk.f32.mxu1 %vm318_vm5, %v404_v36 }
 0x2e4   :  { %1654 = vmatmul.mubr.msk.f32.vlgmr.msra.gmra.mxu1 %vm318_vm5, %v405_v41  ;;  %v871_v41 = vmul.f32 %v1879_v28, %v1940_v54  ;;  %v48_v28 = vld [vmem:[%s2159_s5 + $0x78] sm:$0xff]  ;;  %v2096_v54 = vld [vmem:[%s2160_s6 + $0x8] sm:$0x7] }
 0x2e5   :  { %1675 = vmatprep.mubr.msk.f32.mxu1 %vm229_vm3, %v1929_v47 }
 0x3a4   :  { %v1655_v43 = vpop.f32.mrf.mxu1 }
 0x3a5   :  { %v491_v44 = vadd.f32 %v1655_v43, %v409_v42 }
 0x3a6   :  { %v485_v48 = vpop.f32.mrf.mxu1 }
 0x3a7   :  { %v486_v49 = vadd.f32 %v485_v48, %v409_v42  ;;  %1657 = vmatpush3.msk.msra.mxu0 %vm142_vm1, %v491_v44 }
 0x3a8   :  { %1658 = vmatprep.subr.mxu0 %v1778_v4 }
 0x3a9   :  { %1659 = vmatpush3.msra.mxu0 %v486_v49 }
 0x3aa   :  { %1661 = vmatmul.mubr.msk.f32.vlgmr.msra.gmra.mxu0 %vm132_vm2, %v1885_v30  ;;  %1685 = vmatprep.subr.msk.mxu0 %vm325_vm4, %v43_v8 }
 0x3ab   :  { %1663 = vmatprep.mubr.msk.f32.mxu0 %vm1780_vm0, %v1778_v4  ;;  %1686 = vmatpush3.msk.msra.mxu0 %vm325_vm4, %v43_v8 }
 0x3ac   :  { %1687 = vmatprep.subr.mxu0 %v42_v11 }
 0x3ad   :  { %1688 = vmatpush3.msra.mxu0 %v42_v11 }
 0x3ae   :  { %1664 = vmatmul.mubr.msk.f32.gmra.mxu0 %vm132_vm2, %v1899_v37 }
 0x3af   :  { %1666 = vmatprep.mubr.msk.f32.mxu0 %vm1780_vm0, %v1778_v4 }
 0x3b2   :  { %1667 = vmatmul.mubr.msk.f32.gmra.mxu0 %vm132_vm2, %v1912_v40 }
 0x46a   :  { %v587_v50 = vpop.f32.mrf.mxu0 }
 0x46b   :  { %v601_v23 = vmul.f32 %v587_v50, %v515_v3  ;;  %v56_v3 = vld [vmem:[%s2159_s5 + $0xf0] sm:$0xff] }
 0x46c   :  { %v1662_v52 = vpop.f32.mrf.mxu0 }
 0x46e   :  { %v592_v57 = vpop.f32.mrf.mxu0 }
 0x46f   :  { %v602_v6 = vmul.f32 %v592_v57, %v516_v0 }
 0x470   :  { %v1665_v60 = vpop.f32.mrf.mxu0 }
 0x472   :  { %v597_v63 = vpop.f32.mrf.mxu0 }
 0x473   :  { %v603_v1 = vmul.f32 %v597_v63, %v517_v62  ;;  %v38_v62 = vld [vmem:[%s2158_s4 + $0x8] sm:$0xf] }
 0x474   :  { %v1668_v2 = vpop.f32.mrf.mxu0 }
 0x475   :  { %1669 = vmatprep.subr.msk.mxu1 %vm142_vm1, %v603_v1  ;;  %v1782_v2 = vmov 3  }
 0x476   :  { %1670 = vmatpush3.msk.msra.mxu1 %vm142_vm1, %v603_v1  ;;  %v1781_v1 = vmov 2  }
 0x477   :  { %1671 = vmatprep.subr.mxu1 %v602_v6 }
 0x478   :  { %1672 = vmatpush3.msra.mxu1 %v602_v6  ;;  %v53_v6 = vld [vmem:[%s2159_s5 + $0xd8] sm:$0xff] }
 0x479   :  { %1673 = vmatprep.subr.mxu1 %v601_v23  ;;  %v1239_v11 = vrot.slane %v53_v6, %v1866_v20 }
 0x47a   :  { %1674 = vmatpush3.msra.mxu1 %v601_v23  ;;  %v54_v23 = vld [vmem:[%s2159_s5 + $0xe0] sm:$0xff] }
 0x47b   :  { %1676 = vmatmul.mubr.msk.f32.vlgmr.msra.gmra.mxu1 %vm229_vm3, %v1954_v17  ;;  %1678 = vmatprep.subr.msk.mxu1 %vm325_vm4, %v47_v27 }
 0x47c   :  { %1679 = vmatpush3.msk.msra.mxu1 %vm325_vm4, %v47_v27  ;;  %v1230_v27 = vrot.slane %v53_v6, %v1846_v10 }
 0x47d   :  { %1680 = vmatprep.subr.mxu1 %v46_v38 }
 0x47e   :  { %1681 = vmatpush3.msra.mxu1 %v46_v38  ;;  %v1266_v38 = vrot.slane %v53_v6, %v2000_v51 }
 0x47f   :  { %1692 = vmatprep.subr.mxu1 %v1778_v4 }
 0x53b   :  { %v1677_v45 = vpop.f32.mrf.mxu1 }
 0x53d   :  { %v673_v7 = vpop.f32.mrf.mxu1 }
 0x53e   :  { %1682 = vmatprep.mubr.msk.f32.mxu1 %vm318_vm5, %v673_v7  ;;  %v1320_v7 = vrot.slane %v54_v23, %v2000_v51 }
 0x53f   :  { %1683 = vmatmul.mubr.msk.f32.vlgmr.msra.gmra.mxu1 %vm318_vm5, %v1677_v45  ;;  %v1293_v45 = vrot.slane %v54_v23, %v1846_v10 }
 0x540   :  { %1696 = vmatprep.mubr.msk.f32.mxu1 %vm1780_vm0, %v1778_v4 }
 0x5ff   :  { %v1684_v15 = vpop.f32.mrf.mxu1 }
 0x600   :  { %v767_v16 = vadd.f32 %v1684_v15, %v685_v14  ;;  %v1298_v15 = vrot.slane %v54_v23, %v1866_v20 }
 0x601   :  { %v761_v18 = vpop.f32.mrf.mxu1 }
 0x602   :  { %v762_v19 = vadd.f32 %v761_v18, %v685_v14  ;;  %v771_v22 = vmax.f32 %v767_v16, 0.0  ;;  %v1271_v14 = vrot.slane %v53_v6, %v2062_v35  ;;  %v1325_v16 = vrot.slane %v54_v23, %v2062_v35 }
 0x603   :  { %v1249_v18 = vrot.slane %v53_v6, %v2045_v25 }
 0x604   :  { %v770_v21 = vmax.f32 %v762_v19, 0.0  ;;  %v1277_v19 = vrot.slane %v53_v6, %v1977_v29 }
 0x606   :  { %1689 = vmatprep.mubr.msk.f32.mxu0 %vm318_vm5, %v770_v21  ;;  %v1304_v21 = vrot.slane %v54_v23, %v2045_v25 }
 0x607   :  { %1690 = vmatmul.mubr.msk.f32.vlgmr.msra.gmra.mxu0 %vm318_vm5, %v771_v22  ;;  %v1331_v22 = vrot.slane %v54_v23, %v1977_v29 }
 0x608   :  { %1711 = vmatprep.mubr.msk.f32.mxu0 %vm229_vm3, %v1929_v47 }
 0x6c7   :  { %v1691_v31 = vpop.f32.mrf.mxu0 }
 0x6c8   :  { %v857_v32 = vadd.f32 %v1691_v31, %v775_v26  ;;  %v1283_v31 = vrot.slane %v53_v6, %v2036_v13 }
 0x6c9   :  { %v851_v33 = vpop.f32.mrf.mxu0 }
 0x6ca   :  { %v852_v34 = vadd.f32 %v851_v33, %v775_v26  ;;  %1693 = vmatpush3.msk.msra.mxu1 %vm142_vm1, %v857_v32  ;;  %v1259_v26 = vrot.slane %v53_v6, %v1943_v58 }
 0x6cb   :  { %1694 = vmatprep.subr.mxu1 %v1778_v4 }
 0x6cc   :  { %1695 = vmatpush3.msra.mxu1 %v852_v34 }
 0x6cd   :  { %1697 = vmatmul.mubr.msk.f32.vlgmr.msra.gmra.mxu1 %vm132_vm2, %v1885_v30  ;;  %v864_v30 = vmul.f32 %v1872_v24, %v1938_v53  ;;  %v37_v53 = vld [vmem:[%s2158_s4] sm:$0xff] }
 0x6ce   :  { %1699 = vmatprep.mubr.msk.f32.mxu1 %vm1780_vm0, %v1778_v4 }
 0x6cf   :  { %v874_v44 = vadd.f32 %v871_v41, %v864_v30  ;;  %v55_v30 = vld [vmem:[%s2159_s5 + $0xe8] sm:$0xff] }
 0x6d0   :  { %v1399_v6 = vrot.slane %v55_v30, %v1977_v29 }
 0x6d1   :  { %1700 = vmatmul.mubr.msk.f32.gmra.mxu1 %vm132_vm2, %v1899_v37  ;;  %v880_v37 = vrot.slane %v1854_v12, %v2062_v35  ;;  %v49_v12 = vld [vmem:[%s2159_s5 + $0x80] sm:$0xff]  ;;  %s1783_s5 = smov [#allocation2]  }
 0x6d2   :  { %1702 = vmatprep.mubr.msk.f32.mxu1 %vm1780_vm0, %v1778_v4  ;;  %s1516_s0 = sshll.u32 %s1783_s5, 4  ;;  %s1517_s0 = int_to_ptr.vmem [resolvable:$true] %s1516_s0 }
 0x6d3   :  { %v883_v48 = vadd.f32 %v880_v37, %v1924_v46  ;;  %v882_v49 = vadd.f32 %v880_v37, %v1903_v39  ;;  %v881_v52 = vadd.f32 %v880_v37, %v874_v44  ;;  %s1755_s9 = scalar_lea.vmem %s1517_s0, 32  ;;  %p1760_p1 = scmp.lt.s32.totalorder %s1517_s0, %s1517_s0 }
 0x6d4   :  { %p1756_p0 = scmp.ne.s32.totalorder %s1517_s0, %s1755_s9  ;;  %p1761_p2 = scmp.lt.s32.totalorder %s1755_s9, %s1755_s9 }
 0x6d5   :  { %1703 = vmatmul.mubr.msk.f32.gmra.mxu1 %vm132_vm2, %v1912_v40 }
 0x6d6   :  { %1725 = vmatprep.mubr.msk.f32.mxu1 %vm132_vm2, %v37_v53  ;;  %v1352_v53 = vrot.slane %v55_v30, %v1846_v10  ;;  %p1762_p3 = por %p1761_p2, %p1760_p1 }
 0x6d8   :  { %p1763_p4 = pnand %p1762_p3, %p1756_p0 }
 0x78d   :  { %v953_v47 = vpop.f32.mrf.mxu1 }
 0x78e   :  { %v967_v24 = vmul.f32 %v953_v47, %v881_v52 }
 0x78f   :  { %v1698_v36 = vpop.f32.mrf.mxu1 }
 0x791   :  { %v958_v42 = vpop.f32.mrf.mxu1 }
 0x792   :  { %v968_v55 = vmul.f32 %v958_v42, %v882_v49  ;;  %v1361_v49 = vrot.slane %v55_v30, %v1866_v20 }
 0x793   :  { %v1701_v43 = vpop.f32.mrf.mxu1 }
 0x795   :  { %v963_v40 = vpop.f32.mrf.mxu1 }
 0x796   :  { %v969_v9 = vmul.f32 %v963_v40, %v883_v48  ;;  %v1310_v48 = vrot.slane %v54_v23, %v1943_v58  ;;  %v1337_v40 = vrot.slane %v54_v23, %v2036_v13 }
 0x797   :  { %v1704_v50 = vpop.f32.mrf.mxu1 }
 0x798   :  { %1705 = vmatprep.subr.msk.mxu0 %vm142_vm1, %v969_v9 }
 0x799   :  { %1706 = vmatpush3.msk.msra.mxu0 %vm142_vm1, %v969_v9  ;;  %v1393_v9 = vrot.slane %v55_v30, %v2062_v35 }
 0x79a   :  { %1707 = vmatprep.subr.mxu0 %v968_v55 }
 0x79b   :  { %1708 = vmatpush3.msra.mxu0 %v968_v55 }
 0x79c   :  { %1709 = vmatprep.subr.mxu0 %v967_v24 }
 0x79d   :  { %1710 = vmatpush3.msra.mxu0 %v967_v24 }
 0x79e   :  { %1712 = vmatmul.mubr.msk.f32.vlgmr.msra.gmra.mxu0 %vm229_vm3, %v1954_v17  ;;  %1714 = vmatprep.subr.msk.mxu0 %vm325_vm4, %v49_v12  ;;  %v1051_v17 = vrot.slane %v2096_v54, %v1846_v10 }
 0x79f   :  { %1715 = vmatpush3.msk.msra.mxu0 %vm325_vm4, %v49_v12 }
 0x7a0   :  { %1716 = vmatprep.subr.mxu0 %v48_v28 }
 0x7a1   :  { %1717 = vmatpush3.msra.mxu0 %v48_v28 }
 0x7a2   :  { %1728 = vmatprep.subr.mxu0 %v1778_v4 }
 0x85e   :  { %v1713_v39 = vpop.f32.mrf.mxu0 }
 0x860   :  { %v1039_v46 = vpop.f32.mrf.mxu0 }
 0x861   :  { %1718 = vmatprep.mubr.msk.f32.mxu0 %vm318_vm5, %v1039_v46 }
 0x862   :  { %1719 = vmatmul.mubr.msk.f32.vlgmr.msra.gmra.mxu0 %vm318_vm5, %v1713_v39 }
 0x863   :  { %1730 = vmatprep.mubr.msk.f32.mxu0 %vm1780_vm0, %v1778_v4  ;;  %1729 = vmatpush3.msra.mxu0 %v56_v3  ;;  %v1371_v3 = vrot.slane %v55_v30, %v2045_v25 }
 0x922   :  { %v1720_v56 = vpop.f32.mrf.mxu0 }
 0x923   :  { %v1133_v57 = vadd.f32 %v1720_v56, %v1051_v17 }
 0x924   :  { %v1127_v59 = vpop.f32.mrf.mxu0 }
 0x925   :  { %v1137_v60 = vmax.f32 %v1133_v57, 0.0  ;;  %v1128_v61 = vadd.f32 %v1127_v59, %v1051_v17  ;;  %v1388_v17 = vrot.slane %v55_v30, %v2000_v51 }
 0x927   :  { %v1136_v4 = vmax.f32 %v1128_v61, 0.0  ;;  %1721 = vmatprep.subr.msk.mxu1 %vm142_vm1, %v1137_v60 }
 0x928   :  { %1722 = vmatpush3.msk.msra.mxu1 %vm142_vm1, %v1137_v60 }
 0x929   :  { %1723 = vmatprep.subr.mxu1 %v1136_v4 }
 0x92a   :  { %1724 = vmatpush3.msra.mxu1 %v1136_v4 }
 0x92b   :  { %1726 = vmatmul.mubr.msk.f32.vlgmr.msra.gmra.mxu1 %vm132_vm2, %v38_v62 }
 0x9eb   :  { %v1727_v63 = vpop.f32.mrf.mxu1 }
 0x9ec   :  { %1346 = vperm.xlu1 %1743, %v1727_v63  }
 0x9ed   :  { %v1213_v0 = vpop.f32.mrf.mxu1 }
 0x9ee   :  { %1224 = vperm.xlu0 %1740, %v1213_v0  }
 0x9f0   :  { %1744 = vset.pattern.permute.xlu1 %v1779_v5 }
 0x9f1   :  { %1233 = vperm.xlu1 %1744, %v1213_v0  }
 0x9f2   :  { %1745 = vset.pattern.permute.xlu0 %v1781_v1 }
 0x9f3   :  { %1243 = vperm.xlu0 %1745, %v1213_v0  }
 0x9f5   :  { %1747 = vset.pattern.permute.xlu1 %v1782_v2 }
 0x9f6   :  { %1253 = vperm.xlu1 %1747, %v1213_v0  }
 0x9f7   :  { %1746 = vset.pattern.permute.xlu0 %v1779_v5 }
 0x9f8   :  { %1355 = vperm.xlu0 %1746, %v1727_v63  }
 0x9fa   :  { %1748 = vset.pattern.permute.xlu1 %v1781_v1 }
 0x9fb   :  { %1365 = vperm.xlu1 %1748, %v1727_v63  }
 0x9fc   :  { %1750 = vset.pattern.permute.xlu0 %v1782_v2 }
 0x9ff   :  { %1749 = vset.pattern.permute.xlu1 %v1782_v2 }
 0xa00   :  { %1375 = vperm.xlu1 %1749, %v1727_v63  }
 0xa67   :  { %v1347_v5 = vpop.permute.xlu1 %1346 }
 0xa68   :  { %v1389_v51 = vmul.f32 %v1388_v17, %v1347_v5 }
 0xa69   :  { %v1225_v8 = vpop.permute.xlu0 %1224 }
 0xa6a   :  { %v1231_v32 = vmul.f32 %v1230_v27, %v1225_v8  ;;  %v1267_v33 = vmul.f32 %v1266_v38, %v1225_v8  ;;  %v1294_v34 = vmul.f32 %v1293_v45, %v1225_v8  ;;  %v1321_v47 = vmul.f32 %v1320_v7, %v1225_v8 }
 0xa6b   :  { %v1353_v27 = vmul.f32 %v1352_v53, %v1347_v5  ;;  %v1381_v45 = vrot.slane %v55_v30, %v1943_v58 }
 0xa6c   :  { %v1234_v36 = vpop.permute.xlu1 %1233 }
 0xa6d   :  { %v1240_v41 = vmul.f32 %v1239_v11, %v1234_v36  ;;  %v1272_v42 = vmul.f32 %v1271_v14, %v1234_v36  ;;  %v1299_v37 = vmul.f32 %v1298_v15, %v1234_v36  ;;  %v1326_v43 = vmul.f32 %v1325_v16, %v1234_v36 }
 0xa6e   :  { %v1244_v44 = vpop.permute.xlu0 %1243  ;;  %v1405_v14 = vrot.slane %v55_v30, %v2036_v13 }
 0xa6f   :  { %v1241_v50 = vadd.f32 %v1240_v41, %v1231_v32  ;;  %v1273_v52 = vadd.f32 %v1272_v42, %v1267_v33  ;;  %v1300_v55 = vadd.f32 %v1299_v37, %v1294_v34  ;;  %v1327_v24 = vadd.f32 %v1326_v43, %v1321_v47 }
 0xa70   :  { %v1250_v12 = vmul.f32 %v1249_v18, %v1244_v44  ;;  %v1278_v28 = vmul.f32 %v1277_v19, %v1244_v44  ;;  %v1305_v39 = vmul.f32 %v1304_v21, %v1244_v44  ;;  %v1332_v46 = vmul.f32 %v1331_v22, %v1244_v44 }
 0xa71   :  { %v1254_v56 = vpop.permute.xlu1 %1253  ;;  %v1415_v41 = vrot.slane %v2096_v54, %v1866_v20  ;;  %v1421_v44 = vrot.slane %v2096_v54, %v2045_v25 }
 0xa72   :  { %v1251_v57 = vadd.f32 %v1250_v12, %v1241_v50  ;;  %v1279_v59 = vadd.f32 %v1278_v28, %v1273_v52  ;;  %v1306_v60 = vadd.f32 %v1305_v39, %v1300_v55  ;;  %v1333_v61 = vadd.f32 %v1332_v46, %v1327_v24 }
 0xa73   :  { %v1260_v4 = vmul.f32 %v1259_v26, %v1254_v56  ;;  %v1284_v62 = vmul.f32 %v1283_v31, %v1254_v56  ;;  %v1311_v35 = vmul.f32 %v1310_v48, %v1254_v56  ;;  %v1338_v63 = vmul.f32 %v1337_v40, %v1254_v56  ;;  %v1356_v0 = vpop.permute.xlu0 %1355 }
 0xa74   :  { %v1362_v1 = vmul.f32 %v1361_v49, %v1356_v0  ;;  %v1394_v2 = vmul.f32 %v1393_v9, %v1356_v0 }
 0xa75   :  { %v1285_v23 = vadd.f32 %v1284_v62, %v1279_v59  ;;  %v1312_v10 = vadd.f32 %v1311_v35, %v1306_v60  ;;  %v1261_v7 = vadd.f32 %v1260_v4, %v1251_v57  ;;  %v1339_v11 = vadd.f32 %v1338_v63, %v1333_v61 }
 0xa76   :  { %v1366_v38 = vpop.permute.xlu1 %1365  ;;  %v1363_v15 = vadd.f32 %v1362_v1, %v1353_v27  ;;  %v1395_v16 = vadd.f32 %v1394_v2, %v1389_v51 }
 0xa77   :  { %v1287_v8 = vrot.slane %v1285_v23, 2  ;;  %v1372_v18 = vmul.f32 %v1371_v3, %v1366_v38  ;;  %v1400_v19 = vmul.f32 %v1399_v6, %v1366_v38  ;;  %v1314_v22 = vrot.slane %v1312_v10, 4 }
 0xa78   :  { %v1341_v26 = vrot.slane %v1339_v11, 6 }
 0xa79   :  { %v1289_v21 = vadd.f32 %v1287_v8, %v1261_v7  ;;  %v1373_v32 = vadd.f32 %v1372_v18, %v1363_v15  ;;  %v1401_v33 = vadd.f32 %v1400_v19, %v1395_v16 }
 0xa7b   :  { %v1376_v29 = vpop.permute.xlu1 %1375  ;;  %v1316_v31 = vadd.f32 %v1314_v22, %v1289_v21 }
 0xa7c   :  { %v1382_v5 = vmul.f32 %v1381_v45, %v1376_v29  ;;  %v1406_v34 = vmul.f32 %v1405_v14, %v1376_v29 }
 0xa7d   :  { %v1343_v47 = vadd.f32 %v1341_v26, %v1316_v31 }
 0xa7e   :  { %v1383_v58 = vadd.f32 %v1382_v5, %v1373_v32  ;;  %v1407_v36 = vadd.f32 %v1406_v34, %v1401_v33 }
 0xa80   :  { %v1384_v13 = vadd.f32 %v1383_v58, %v1343_v47  ;;  %v1409_v30 = vrot.slane %v1407_v36, 2 }
 0xa82   :  { %v1411_v42 = vadd.f32 %v1409_v30, %v1384_v13 }
 0xa84   :  { %v1416_v37 = vadd.f32 %v1415_v41, %v1411_v42 }
 0xa86   :  { %v1417_v43 = vmax.f32 %v1416_v37, 0.0 }
 0xa88   :  { %1731 = vmatmul.mubr.msk.f32.vlgmr.msra.gmra.mxu0 %vm1422_vm6, %v1417_v43 }
 0xb48   :  { %v1492_v48 = vpop.f32.mrf.mxu0 }
 0xb49   :  { %v1493_v40 = vadd.f32 %v1492_v48, %v1421_v44 }
 0xb4a   :  { %v1732_v49 = vpop.f32.mrf.mxu0 }
 0xb4b   :  { %v1497_v9 = vsel %vm1496_vm7, %v1493_v40, -inf }
 0xb4c   :  { %1498 = vmax.xlane.f32.xlu0 %v1497_v9 }
 0xbd5   :  { %v1499_v50 = vpop.xlane.xlu0 %1498 }
 0xbd6   :  { %v1500_v52 = vsub.f32 %v1493_v40, %v1499_v50 }
 0xbd8   :  { %v1501_v20 = vmul.f32 1.442695, %v1500_v52 }
 0xbda   :  { %1751 = vpow2.f32 %v1501_v20 }
 0xbe7   :  { %v1752_v55 = vpop.eup %1751 }
 0xbe8   :  { %v1503_v24 = vsel %vm1496_vm7, %v1752_v55, 0.0 }
 0xbe9   :  { %1504 = vadd.xlane.f32.xlu1 %v1503_v24 }
 0xc72   :  { %v1505_v12 = vpop.xlane.xlu1 %1504 }
 0xc73   :  { %1753 = vlog2.f32 %v1505_v12 }
 0xc80   :  { %v1754_v28 = vpop.eup %1753 }
 0xc81   :  { %v1507_v25 = vmul.f32 0.6931472, %v1754_v28 }
 0xc83   :  { %v1508_v54 = vsub.f32 %v1500_v52, %v1507_v25 }
 0xc85   :  { %1509 = vst.msk [vmem:[#allocation2] sm:$0x3] %vm1496_vm7, %v1508_v54 }
 0xc86   :  { %1766 = shalt.err (!%p1763_p4)
}
 0xc87   :  { %1519 = dma.vmem_to_hbm [thread:$0]  %s1517_s0, 32, %s2161_s7, [#allocation3]  }
 0xc88   :  { %1775 = dma.done.wait [#allocation3], 32  }
 0xc89   :  { %1776 = vsyncadd [#allocation3], 4294967264 }
 0xc8a   :  { %1523 = vsyncpa [#allocation3], 1 }

</bundles_post_ra>
